<compile_context>
chip_gen: v5e
topology: v5e:2x2
jax: 0.10.0
libtpu: 0.0.40
codegen_flags: <defaults>
</compile_context>

<pallas_src>
import math
import jax
import jax.numpy as jnp
from jax.experimental import pallas as pl


def _rnn_kernel(pre_ref, whh_ref, wout_ref, bout_ref, o_ref):
    """Full RNN recurrence + output projection in one invocation.

    pre_ref : (S, B, H) f32   hoisted input projection + folded biases
    whh_ref : (H, H)    bf16  recurrent weight (transposed vs. nn.Linear)
    wout_ref: (H, O)    f32   output weight   (transposed vs. nn.Linear)
    bout_ref: (1, O)    f32
    o_ref   : (B, O)    f32
    """
    S = pre_ref.shape[0]
    w_hh = whh_ref[...]  # hoisted once; lives in vregs across the unrolled loop

    # t == 0: initial hidden state is zero, so h @ W_hh contributes nothing.
    h = jnp.clip(pre_ref[0], -1.0, 1.0)

    # Statically unrolled serial recurrence (S known at trace time).
    for t in range(1, S):
        rec = jnp.dot(h.astype(jnp.bfloat16), w_hh,
                      preferred_element_type=jnp.float32)
        h = jnp.clip(pre_ref[t] + rec, -1.0, 1.0)  # F.hardtanh default bounds

    out = jnp.dot(h, wout_ref[...], preferred_element_type=jnp.float32)
    o_ref[...] = (out + bout_ref[...]).astype(o_ref.dtype)


def rnn_model_forward(xs, params):
    """xs: (batch, seq, input_dim) float32 -> (batch, output_dim) float32."""
    w_ih, b_ih, w_hh, b_hh, w_out, b_out = params
    B, S, I = xs.shape
    H = w_ih.shape[1]
    O = w_out.shape[1]

    # Hoisted input projection with folded biases, emitted time-major so the
    # kernel slices along the leading dim. The layout change fuses into the
    # matmul output; xs itself is never transposed separately.
    bias = (b_ih + b_hh).reshape(1, 1, H)
    pre_x = jnp.einsum("bsi,ih->sbh", xs, w_ih,
                       preferred_element_type=jnp.float32) + bias

    # No grid / no BlockSpecs: every operand is mapped whole into VMEM.
    return pl.pallas_call(
        _rnn_kernel,
        out_shape=jax.ShapeDtypeStruct((B, O), jnp.float32),
    )(pre_x, w_hh.astype(jnp.bfloat16), w_out, b_out)


def init_params(key, input_dim, hidden_dim, output_dim):
    """Deterministic init mimicking RNNHardCell._init_weights (uniform +/-1/sqrt(H)).

    All weights stored transposed vs. PyTorch nn.Linear: shape (in, out).
    """
    stdv = 1.0 / math.sqrt(hidden_dim)
    k = jax.random.split(key, 6)
    w_ih = jax.random.uniform(k[0], (input_dim, hidden_dim), jnp.float32, -stdv, stdv)
    b_ih = jax.random.uniform(k[1], (1, hidden_dim), jnp.float32, -stdv, stdv)
    w_hh = jax.random.uniform(k[2], (hidden_dim, hidden_dim), jnp.float32, -stdv, stdv)
    b_hh = jax.random.uniform(k[3], (1, hidden_dim), jnp.float32, -stdv, stdv)
    w_out = jax.random.uniform(k[4], (hidden_dim, output_dim), jnp.float32, -stdv, stdv)
    b_out = jax.random.uniform(k[5], (1, output_dim), jnp.float32, -stdv, stdv)
    return (w_ih, b_ih, w_hh, b_hh, w_out, b_out)


def _reference_forward(xs, params, bf16_recurrent=False):
    """Pure-JAX reference replicating the PyTorch loop.

    With bf16_recurrent=True it mirrors the kernel's bf16 recurrent-matmul
    operands (f32 accumulation) for a tight numerical comparison.
    """
    w_ih, b_ih, w_hh, b_hh, w_out, b_out = params
    B, S, _ = xs.shape
    H = w_ih.shape[1]
    w_hh_mm = w_hh.astype(jnp.bfloat16) if bf16_recurrent else w_hh
    h = jnp.zeros((B, H), jnp.float32)
    for t in range(S):
        x = xs[:, t, :]
        rec = jnp.dot(h.astype(w_hh_mm.dtype), w_hh_mm,
                      preferred_element_type=jnp.float32)
        h = jnp.clip(x @ w_ih + b_ih + b_hh + rec, -1.0, 1.0)
    return h @ w_out + b_out


if __name__ == "__main__":
    input_dim, hidden_dim, output_dim = 13, 128, 2
    batch, seq = 8, 8

    key = jax.random.PRNGKey(0)
    kx, kp = jax.random.split(key)
    xs = jax.random.normal(kx, (batch, seq, input_dim), jnp.float32)
    params = init_params(kp, input_dim, hidden_dim, output_dim)

    out = jax.block_until_ready(rnn_model_forward(xs, params))
    assert out.shape == (batch, output_dim)

    # Tight check vs. a reference that mirrors the kernel's bf16 recurrent matmul.
    ref_bf16 = _reference_forward(xs, params, bf16_recurrent=True)
    assert jnp.allclose(out, ref_bf16, atol=1e-4, rtol=1e-4), \
        "mismatch vs bf16-matched reference"

    # Loose check vs. exact f32 PyTorch semantics (bf16 MXU operands introduce
    # ~1e-3-level deviations).
    ref_f32 = _reference_forward(xs, params, bf16_recurrent=False)
    assert jnp.allclose(out, ref_f32, atol=5e-2, rtol=5e-2), \
        "mismatch vs f32 reference"

    print("KERNEL_OK")
</pallas_src>

<mosaic_0001>
module attributes {stable_mosaic.version = 11 : i64} {
  func.func @_rnn_kernel(%arg0: memref<8x8x128xf32, #tpu.memory_space<vmem>>, %arg1: memref<128x128xbf16, #tpu.memory_space<vmem>>, %arg2: memref<128x2xf32, #tpu.memory_space<vmem>>, %arg3: memref<1x2xf32, #tpu.memory_space<vmem>>, %arg4: memref<8x2xf32, #tpu.memory_space<vmem>>) attributes {dimension_semantics = [], scalar_prefetch = 0 : i64, scratch_operands = 0 : i64, tpu.core_type = #tpu.core_type<tc>} {
    %c0 = arith.constant 0 : index
    %c0_0 = arith.constant 0 : index
    %0 = vector.load %arg1[%c0, %c0_0] : memref<128x128xbf16, #tpu.memory_space<vmem>>, vector<128x128xbf16>
    %c0_1 = arith.constant 0 : index
    %c0_2 = arith.constant 0 : index
    %c0_3 = arith.constant 0 : index
    %1 = vector.load %arg0[%c0_1, %c0_2, %c0_3] : memref<8x8x128xf32, #tpu.memory_space<vmem>>, vector<1x8x128xf32>
    %2 = vector.shape_cast %1 : vector<1x8x128xf32> to vector<8x128xf32>
    %cst = arith.constant -1.000000e+00 : f32
    %cst_4 = arith.constant 1.000000e+00 : f32
    %3 = vector.broadcast %cst : f32 to vector<8x128xf32>
    %4 = arith.maximumf %3, %2 : vector<8x128xf32>
    %5 = vector.broadcast %cst_4 : f32 to vector<8x128xf32>
    %6 = arith.minimumf %5, %4 : vector<8x128xf32>
    %7 = arith.truncf %6 : vector<8x128xf32> to vector<8x128xbf16>
    %cst_5 = arith.constant dense<0.000000e+00> : vector<8x128xf32>
    %8 = tpu.matmul %7, %0, %cst_5 {dimension_numbers = #tpu.dot_dimension_numbers<[1], [0], [0], [1], [0, 0, 1, 1], [], []>} : vector<8x128xbf16>, vector<128x128xbf16>, vector<8x128xf32> -> vector<8x128xf32>
    %c1 = arith.constant 1 : index
    %c0_6 = arith.constant 0 : index
    %c0_7 = arith.constant 0 : index
    %9 = vector.load %arg0[%c1, %c0_6, %c0_7] : memref<8x8x128xf32, #tpu.memory_space<vmem>>, vector<1x8x128xf32>
    %10 = vector.shape_cast %9 : vector<1x8x128xf32> to vector<8x128xf32>
    %11 = arith.addf %10, %8 : vector<8x128xf32>
    %cst_8 = arith.constant -1.000000e+00 : f32
    %cst_9 = arith.constant 1.000000e+00 : f32
    %12 = vector.broadcast %cst_8 : f32 to vector<8x128xf32>
    %13 = arith.maximumf %12, %11 : vector<8x128xf32>
    %14 = vector.broadcast %cst_9 : f32 to vector<8x128xf32>
    %15 = arith.minimumf %14, %13 : vector<8x128xf32>
    %16 = arith.truncf %15 : vector<8x128xf32> to vector<8x128xbf16>
    %cst_10 = arith.constant dense<0.000000e+00> : vector<8x128xf32>
    %17 = tpu.matmul %16, %0, %cst_10 {dimension_numbers = #tpu.dot_dimension_numbers<[1], [0], [0], [1], [0, 0, 1, 1], [], []>} : vector<8x128xbf16>, vector<128x128xbf16>, vector<8x128xf32> -> vector<8x128xf32>
    %c2 = arith.constant 2 : index
    %c0_11 = arith.constant 0 : index
    %c0_12 = arith.constant 0 : index
    %18 = vector.load %arg0[%c2, %c0_11, %c0_12] : memref<8x8x128xf32, #tpu.memory_space<vmem>>, vector<1x8x128xf32>
    %19 = vector.shape_cast %18 : vector<1x8x128xf32> to vector<8x128xf32>
    %20 = arith.addf %19, %17 : vector<8x128xf32>
    %cst_13 = arith.constant -1.000000e+00 : f32
    %cst_14 = arith.constant 1.000000e+00 : f32
    %21 = vector.broadcast %cst_13 : f32 to vector<8x128xf32>
    %22 = arith.maximumf %21, %20 : vector<8x128xf32>
    %23 = vector.broadcast %cst_14 : f32 to vector<8x128xf32>
    %24 = arith.minimumf %23, %22 : vector<8x128xf32>
    %25 = arith.truncf %24 : vector<8x128xf32> to vector<8x128xbf16>
    %cst_15 = arith.constant dense<0.000000e+00> : vector<8x128xf32>
    %26 = tpu.matmul %25, %0, %cst_15 {dimension_numbers = #tpu.dot_dimension_numbers<[1], [0], [0], [1], [0, 0, 1, 1], [], []>} : vector<8x128xbf16>, vector<128x128xbf16>, vector<8x128xf32> -> vector<8x128xf32>
    %c3 = arith.constant 3 : index
    %c0_16 = arith.constant 0 : index
    %c0_17 = arith.constant 0 : index
    %27 = vector.load %arg0[%c3, %c0_16, %c0_17] : memref<8x8x128xf32, #tpu.memory_space<vmem>>, vector<1x8x128xf32>
    %28 = vector.shape_cast %27 : vector<1x8x128xf32> to vector<8x128xf32>
    %29 = arith.addf %28, %26 : vector<8x128xf32>
    %cst_18 = arith.constant -1.000000e+00 : f32
    %cst_19 = arith.constant 1.000000e+00 : f32
    %30 = vector.broadcast %cst_18 : f32 to vector<8x128xf32>
    %31 = arith.maximumf %30, %29 : vector<8x128xf32>
    %32 = vector.broadcast %cst_19 : f32 to vector<8x128xf32>
    %33 = arith.minimumf %32, %31 : vector<8x128xf32>
    %34 = arith.truncf %33 : vector<8x128xf32> to vector<8x128xbf16>
    %cst_20 = arith.constant dense<0.000000e+00> : vector<8x128xf32>
    %35 = tpu.matmul %34, %0, %cst_20 {dimension_numbers = #tpu.dot_dimension_numbers<[1], [0], [0], [1], [0, 0, 1, 1], [], []>} : vector<8x128xbf16>, vector<128x128xbf16>, vector<8x128xf32> -> vector<8x128xf32>
    %c4 = arith.constant 4 : index
    %c0_21 = arith.constant 0 : index
    %c0_22 = arith.constant 0 : index
    %36 = vector.load %arg0[%c4, %c0_21, %c0_22] : memref<8x8x128xf32, #tpu.memory_space<vmem>>, vector<1x8x128xf32>
    %37 = vector.shape_cast %36 : vector<1x8x128xf32> to vector<8x128xf32>
    %38 = arith.addf %37, %35 : vector<8x128xf32>
    %cst_23 = arith.constant -1.000000e+00 : f32
    %cst_24 = arith.constant 1.000000e+00 : f32
    %39 = vector.broadcast %cst_23 : f32 to vector<8x128xf32>
    %40 = arith.maximumf %39, %38 : vector<8x128xf32>
    %41 = vector.broadcast %cst_24 : f32 to vector<8x128xf32>
    %42 = arith.minimumf %41, %40 : vector<8x128xf32>
    %43 = arith.truncf %42 : vector<8x128xf32> to vector<8x128xbf16>
    %cst_25 = arith.constant dense<0.000000e+00> : vector<8x128xf32>
    %44 = tpu.matmul %43, %0, %cst_25 {dimension_numbers = #tpu.dot_dimension_numbers<[1], [0], [0], [1], [0, 0, 1, 1], [], []>} : vector<8x128xbf16>, vector<128x128xbf16>, vector<8x128xf32> -> vector<8x128xf32>
    %c5 = arith.constant 5 : index
    %c0_26 = arith.constant 0 : index
    %c0_27 = arith.constant 0 : index
    %45 = vector.load %arg0[%c5, %c0_26, %c0_27] : memref<8x8x128xf32, #tpu.memory_space<vmem>>, vector<1x8x128xf32>
    %46 = vector.shape_cast %45 : vector<1x8x128xf32> to vector<8x128xf32>
    %47 = arith.addf %46, %44 : vector<8x128xf32>
    %cst_28 = arith.constant -1.000000e+00 : f32
    %cst_29 = arith.constant 1.000000e+00 : f32
    %48 = vector.broadcast %cst_28 : f32 to vector<8x128xf32>
    %49 = arith.maximumf %48, %47 : vector<8x128xf32>
    %50 = vector.broadcast %cst_29 : f32 to vector<8x128xf32>
    %51 = arith.minimumf %50, %49 : vector<8x128xf32>
    %52 = arith.truncf %51 : vector<8x128xf32> to vector<8x128xbf16>
    %cst_30 = arith.constant dense<0.000000e+00> : vector<8x128xf32>
    %53 = tpu.matmul %52, %0, %cst_30 {dimension_numbers = #tpu.dot_dimension_numbers<[1], [0], [0], [1], [0, 0, 1, 1], [], []>} : vector<8x128xbf16>, vector<128x128xbf16>, vector<8x128xf32> -> vector<8x128xf32>
    %c6 = arith.constant 6 : index
    %c0_31 = arith.constant 0 : index
    %c0_32 = arith.constant 0 : index
    %54 = vector.load %arg0[%c6, %c0_31, %c0_32] : memref<8x8x128xf32, #tpu.memory_space<vmem>>, vector<1x8x128xf32>
    %55 = vector.shape_cast %54 : vector<1x8x128xf32> to vector<8x128xf32>
    %56 = arith.addf %55, %53 : vector<8x128xf32>
    %cst_33 = arith.constant -1.000000e+00 : f32
    %cst_34 = arith.constant 1.000000e+00 : f32
    %57 = vector.broadcast %cst_33 : f32 to vector<8x128xf32>
    %58 = arith.maximumf %57, %56 : vector<8x128xf32>
    %59 = vector.broadcast %cst_34 : f32 to vector<8x128xf32>
    %60 = arith.minimumf %59, %58 : vector<8x128xf32>
    %61 = arith.truncf %60 : vector<8x128xf32> to vector<8x128xbf16>
    %cst_35 = arith.constant dense<0.000000e+00> : vector<8x128xf32>
    %62 = tpu.matmul %61, %0, %cst_35 {dimension_numbers = #tpu.dot_dimension_numbers<[1], [0], [0], [1], [0, 0, 1, 1], [], []>} : vector<8x128xbf16>, vector<128x128xbf16>, vector<8x128xf32> -> vector<8x128xf32>
    %c7 = arith.constant 7 : index
    %c0_36 = arith.constant 0 : index
    %c0_37 = arith.constant 0 : index
    %63 = vector.load %arg0[%c7, %c0_36, %c0_37] : memref<8x8x128xf32, #tpu.memory_space<vmem>>, vector<1x8x128xf32>
    %64 = vector.shape_cast %63 : vector<1x8x128xf32> to vector<8x128xf32>
    %65 = arith.addf %64, %62 : vector<8x128xf32>
    %cst_38 = arith.constant -1.000000e+00 : f32
    %cst_39 = arith.constant 1.000000e+00 : f32
    %66 = vector.broadcast %cst_38 : f32 to vector<8x128xf32>
    %67 = arith.maximumf %66, %65 : vector<8x128xf32>
    %68 = vector.broadcast %cst_39 : f32 to vector<8x128xf32>
    %69 = arith.minimumf %68, %67 : vector<8x128xf32>
    %c0_40 = arith.constant 0 : index
    %c0_41 = arith.constant 0 : index
    %70 = vector.load %arg2[%c0_40, %c0_41] : memref<128x2xf32, #tpu.memory_space<vmem>>, vector<128x2xf32>
    %cst_42 = arith.constant dense<0.000000e+00> : vector<8x2xf32>
    %71 = tpu.matmul %69, %70, %cst_42 {dimension_numbers = #tpu.dot_dimension_numbers<[1], [0], [0], [1], [0, 0, 1, 1], [], []>} : vector<8x128xf32>, vector<128x2xf32>, vector<8x2xf32> -> vector<8x2xf32>
    %c0_43 = arith.constant 0 : index
    %c0_44 = arith.constant 0 : index
    %72 = vector.load %arg3[%c0_43, %c0_44] : memref<1x2xf32, #tpu.memory_space<vmem>>, vector<1x2xf32>
    %73 = vector.broadcast %72 : vector<1x2xf32> to vector<8x2xf32>
    %74 = arith.addf %71, %73 : vector<8x2xf32>
    %c0_45 = arith.constant 0 : index
    %c0_46 = arith.constant 0 : index
    %75 = vector.load %arg4[%c0_45, %c0_46] : memref<8x2xf32, #tpu.memory_space<vmem>>, vector<8x2xf32>
    tpu.vector_store %arg4[%c0_45, %c0_46], %74 {strides = array<i32>} : memref<8x2xf32, #tpu.memory_space<vmem>>, vector<8x2xf32>,
    return
  }
}

</mosaic_0001>

<bundles_post_ra>
// kernel: tpu_custom_call.1
= control target key start
LH: loop header
LB: loop body
LE: loop exit
PB: predicated region body
PF: predicated region fallthrough
CT: control target
= control target key end

     0   :  { %vm257_vm0 = vcmask 15360   ;;  %s446_s1 = inlined_call_operand.vmem [shape: bf16[128,128], index: 1, kind: input, shape index: {}]   ;;  %s447_s0 = inlined_call_operand.vmem [shape: f32[8,8,128], index: 0, kind: input, shape index: {}]   ;;  %s448_s2 = inlined_call_operand.vmem [shape: f32[128,2], index: 2, kind: input, shape index: {}]   ;;  %s449_s3 = inlined_call_operand.vmem [shape: f32[1,2], index: 3, kind: input, shape index: {}]   ;;  %s450_s4 = inlined_call_operand.vmem [shape: f32[8,2], index: 4, kind: output, shape index: {}]  }
   0x1   :  { %v317_v0 = vld [vmem:[%s446_s1 + $0x38] sm:$0xff]  ;;  %v316_v1 = vld [vmem:[%s446_s1 + $0x30] sm:$0xff]  ;;  %v315_v2 = vld [vmem:[%s446_s1 + $0x28] sm:$0xff] }
   0x2   :  { %85 = vmatpush.bf16.msra.mxu0 %v317_v0  ;;  %104 = vmatpush.bf16.msra.mxu1 %v317_v0  ;;  %v314_v3 = vld [vmem:[%s446_s1 + $0x20] sm:$0xff]  ;;  %v313_v4 = vld [vmem:[%s446_s1 + $0x18] sm:$0xff]  ;;  %v312_v5 = vld [vmem:[%s446_s1 + $0x10] sm:$0xff] }
   0x3   :  { %123 = vmatpush.bf16.msra.mxu2 %v317_v0  ;;  %142 = vmatpush.bf16.msra.mxu3 %v317_v0  ;;  %v311_v6 = vld [vmem:[%s446_s1 + $0x8] sm:$0xff]  ;;  %v33_v7 = vld [vmem:[%s447_s0] sm:$0xff]  ;;  %v298_v17 = vld [vmem:[%s447_s0 + $0x10] sm:$0xff] }
   0x4   :  { %v263_v8 = vclamps-f32 %v33_v7, 1.0  ;;  %v310_v9 = vld [vmem:[%s446_s1] sm:$0xff]  ;;  %v296_v11 = vld [vmem:[%s447_s0 + $0x8] sm:$0xff]  ;;  %v300_v23 = vld [vmem:[%s447_s0 + $0x18] sm:$0xff] }
   0x5   :  { %v302_v29 = vld [vmem:[%s447_s0 + $0x20] sm:$0xff]  ;;  %v304_v35 = vld [vmem:[%s447_s0 + $0x28] sm:$0xff]  ;;  %v232_v41 = vld [vmem:[%s448_s2 + $0x78] sm:$0xff] }
   0x6   :  { %86 = vmatpush.bf16.msra.mxu0 %v316_v1  ;;  %105 = vmatpush.bf16.msra.mxu1 %v316_v1  ;;  %v36_v10 = vpack.c.bf16 %v263_v8, %v263_v8  ;;  %v231_v42 = vld [vmem:[%s448_s2 + $0x70] sm:$0xff]  ;;  %v230_v43 = vld [vmem:[%s448_s2 + $0x68] sm:$0xff]  ;;  %v229_v44 = vld [vmem:[%s448_s2 + $0x60] sm:$0xff] }
   0x7   :  { %124 = vmatpush.bf16.msra.mxu2 %v316_v1  ;;  %143 = vmatpush.bf16.msra.mxu3 %v316_v1  ;;  %v228_v45 = vld [vmem:[%s448_s2 + $0x58] sm:$0xff]  ;;  %v227_v46 = vld [vmem:[%s448_s2 + $0x50] sm:$0xff]  ;;  %v226_v47 = vld [vmem:[%s448_s2 + $0x48] sm:$0xff] }
   0x8   :  { %v225_v48 = vld [vmem:[%s448_s2 + $0x40] sm:$0xff]  ;;  %v224_v49 = vld [vmem:[%s448_s2 + $0x38] sm:$0xff]  ;;  %v223_v50 = vld [vmem:[%s448_s2 + $0x30] sm:$0xff] }
   0x9   :  { %v222_v51 = vld [vmem:[%s448_s2 + $0x28] sm:$0xff]  ;;  %v221_v52 = vld [vmem:[%s448_s2 + $0x20] sm:$0xff]  ;;  %v306_v53 = vld [vmem:[%s447_s0 + $0x30] sm:$0xff] }
   0xa   :  { %87 = vmatpush.bf16.msra.mxu0 %v315_v2  ;;  %106 = vmatpush.bf16.msra.mxu1 %v315_v2  ;;  %v220_v54 = vld [vmem:[%s448_s2 + $0x18] sm:$0xff]  ;;  %v219_v60 = vld [vmem:[%s448_s2 + $0x10] sm:$0xff]  ;;  %v218_v61 = vld [vmem:[%s448_s2 + $0x8] sm:$0xff] }
   0xb   :  { %125 = vmatpush.bf16.msra.mxu2 %v315_v2  ;;  %144 = vmatpush.bf16.msra.mxu3 %v315_v2  ;;  %v217_v62 = vld [vmem:[%s448_s2] sm:$0xff]  ;;  %v308_v63 = vld [vmem:[%s447_s0 + $0x38] sm:$0xff] }
   0xe   :  { %88 = vmatpush.bf16.msra.mxu0 %v314_v3  ;;  %107 = vmatpush.bf16.msra.mxu1 %v314_v3 }
   0xf   :  { %126 = vmatpush.bf16.msra.mxu2 %v314_v3  ;;  %145 = vmatpush.bf16.msra.mxu3 %v314_v3 }
  0x12   :  { %89 = vmatpush.bf16.msra.mxu0 %v313_v4  ;;  %108 = vmatpush.bf16.msra.mxu1 %v313_v4 }
  0x13   :  { %127 = vmatpush.bf16.msra.mxu2 %v313_v4  ;;  %146 = vmatpush.bf16.msra.mxu3 %v313_v4 }
  0x16   :  { %90 = vmatpush.bf16.msra.mxu0 %v312_v5  ;;  %109 = vmatpush.bf16.msra.mxu1 %v312_v5 }
  0x17   :  { %128 = vmatpush.bf16.msra.mxu2 %v312_v5  ;;  %147 = vmatpush.bf16.msra.mxu3 %v312_v5 }
  0x1a   :  { %91 = vmatpush.bf16.msra.mxu0 %v311_v6  ;;  %110 = vmatpush.bf16.msra.mxu1 %v311_v6 }
  0x1b   :  { %129 = vmatpush.bf16.msra.mxu2 %v311_v6  ;;  %148 = vmatpush.bf16.msra.mxu3 %v311_v6 }
  0x1e   :  { %92 = vmatpush.bf16.msra.mxu0 %v310_v9  ;;  %111 = vmatpush.bf16.msra.mxu1 %v310_v9 }
  0x1f   :  { %130 = vmatpush.bf16.msra.mxu2 %v310_v9  ;;  %149 = vmatpush.bf16.msra.mxu3 %v310_v9 }
  0x21   :  { %93 = vmatmul.bf16.vlgmr.msra.gmra.mxu0 %v36_v10 }
  0x22   :  { %161 = vmatpush.bf16.msrb.mxu0 %v317_v0  ;;  %180 = vmatpush.bf16.msrb.mxu1 %v317_v0 }
  0x23   :  { %199 = vmatpush.bf16.msrb.mxu2 %v317_v0  ;;  %237 = vmatpush.msrb.mxu3 %v232_v41 }
  0x25   :  { %238 = vmatpush.msrb.mxu3 %v231_v42 }
  0x26   :  { %162 = vmatpush.bf16.msrb.mxu0 %v316_v1  ;;  %181 = vmatpush.bf16.msrb.mxu1 %v316_v1 }
  0x27   :  { %200 = vmatpush.bf16.msrb.mxu2 %v316_v1  ;;  %239 = vmatpush.msrb.mxu3 %v230_v43 }
  0x29   :  { %240 = vmatpush.msrb.mxu3 %v229_v44 }
  0x2a   :  { %163 = vmatpush.bf16.msrb.mxu0 %v315_v2  ;;  %182 = vmatpush.bf16.msrb.mxu1 %v315_v2 }
  0x2b   :  { %201 = vmatpush.bf16.msrb.mxu2 %v315_v2  ;;  %241 = vmatpush.msrb.mxu3 %v228_v45 }
  0x2d   :  { %242 = vmatpush.msrb.mxu3 %v227_v46 }
  0x2e   :  { %164 = vmatpush.bf16.msrb.mxu0 %v314_v3  ;;  %183 = vmatpush.bf16.msrb.mxu1 %v314_v3 }
  0x2f   :  { %202 = vmatpush.bf16.msrb.mxu2 %v314_v3  ;;  %243 = vmatpush.msrb.mxu3 %v226_v47 }
  0x31   :  { %244 = vmatpush.msrb.mxu3 %v225_v48 }
  0x32   :  { %165 = vmatpush.bf16.msrb.mxu0 %v313_v4  ;;  %184 = vmatpush.bf16.msrb.mxu1 %v313_v4 }
  0x33   :  { %203 = vmatpush.bf16.msrb.mxu2 %v313_v4  ;;  %245 = vmatpush.msrb.mxu3 %v224_v49  ;;  %v318_v4 = vld [vmem:[%s449_s3] ss:$0 sm:$0xff] }
  0x35   :  { %246 = vmatpush.msrb.mxu3 %v223_v50 }
  0x36   :  { %166 = vmatpush.bf16.msrb.mxu0 %v312_v5  ;;  %185 = vmatpush.bf16.msrb.mxu1 %v312_v5 }
  0x37   :  { %204 = vmatpush.bf16.msrb.mxu2 %v312_v5  ;;  %247 = vmatpush.msrb.mxu3 %v222_v51 }
  0x39   :  { %248 = vmatpush.msrb.mxu3 %v221_v52 }
  0x3a   :  { %167 = vmatpush.bf16.msrb.mxu0 %v311_v6  ;;  %186 = vmatpush.bf16.msrb.mxu1 %v311_v6 }
  0x3b   :  { %205 = vmatpush.bf16.msrb.mxu2 %v311_v6  ;;  %249 = vmatpush.msrb.mxu3 %v220_v54 }
  0x3d   :  { %250 = vmatpush.msrb.mxu3 %v219_v60 }
  0x3e   :  { %168 = vmatpush.bf16.msrb.mxu0 %v310_v9  ;;  %187 = vmatpush.bf16.msrb.mxu1 %v310_v9 }
  0x3f   :  { %206 = vmatpush.bf16.msrb.mxu2 %v310_v9  ;;  %251 = vmatpush.msrb.mxu3 %v218_v61 }
  0x41   :  { %252 = vmatpush.msrb.mxu3 %v217_v62 }
  0x9e   :  { %v94_v12 = vpop.f32.mrf.mxu0 }
  0x9f   :  { %v100_v13 = vadd.f32 %v296_v11, %v94_v12 }
  0xa1   :  { %v297_v14 = vclamps-f32 %v100_v13, 1.0 }
  0xa3   :  { %v103_v15 = vpack.c.bf16 %v297_v14, %v297_v14 }
  0xa5   :  { %112 = vmatmul.bf16.vlgmr.msra.gmra.mxu1 %v103_v15 }
  0xa6   :  { %v96_v16 = vpop.f32.mrf.mxu0 }
 0x122   :  { %v113_v18 = vpop.f32.mrf.mxu1 }
 0x123   :  { %v119_v19 = vadd.f32 %v298_v17, %v113_v18 }
 0x125   :  { %v299_v20 = vclamps-f32 %v119_v19, 1.0 }
 0x127   :  { %v122_v21 = vpack.c.bf16 %v299_v20, %v299_v20 }
 0x129   :  { %131 = vmatmul.bf16.vlgmr.msra.gmra.mxu2 %v122_v21 }
 0x12a   :  { %v115_v22 = vpop.f32.mrf.mxu1 }
 0x1ac   :  { %v132_v24 = vpop.f32.mrf.mxu2 }
 0x1ad   :  { %v138_v25 = vadd.f32 %v300_v23, %v132_v24 }
 0x1af   :  { %v301_v26 = vclamps-f32 %v138_v25, 1.0 }
 0x1b1   :  { %v141_v27 = vpack.c.bf16 %v301_v26, %v301_v26 }
 0x1b3   :  { %150 = vmatmul.bf16.vlgmr.msra.gmra.mxu3 %v141_v27 }
 0x1b4   :  { %v134_v28 = vpop.f32.mrf.mxu2 }
 0x236   :  { %v151_v30 = vpop.f32.mrf.mxu3 }
 0x237   :  { %v157_v31 = vadd.f32 %v302_v29, %v151_v30 }
 0x239   :  { %v303_v32 = vclamps-f32 %v157_v31, 1.0 }
 0x23b   :  { %v160_v33 = vpack.c.bf16 %v303_v32, %v303_v32 }
 0x23d   :  { %169 = vmatmul.bf16.vlgmr.msrb.gmra.mxu0 %v160_v33 }
 0x23e   :  { %v153_v34 = vpop.f32.mrf.mxu3 }
 0x2ba   :  { %v170_v36 = vpop.f32.mrf.mxu0 }
 0x2bb   :  { %v176_v37 = vadd.f32 %v304_v35, %v170_v36 }
 0x2bd   :  { %v305_v38 = vclamps-f32 %v176_v37, 1.0 }
 0x2bf   :  { %v179_v39 = vpack.c.bf16 %v305_v38, %v305_v38 }
 0x2c1   :  { %188 = vmatmul.bf16.vlgmr.msrb.gmra.mxu1 %v179_v39 }
 0x2c2   :  { %v172_v40 = vpop.f32.mrf.mxu0 }
 0x33e   :  { %v189_v55 = vpop.f32.mrf.mxu1 }
 0x33f   :  { %v195_v56 = vadd.f32 %v306_v53, %v189_v55 }
 0x341   :  { %v307_v57 = vclamps-f32 %v195_v56, 1.0 }
 0x343   :  { %v198_v58 = vpack.c.bf16 %v307_v57, %v307_v57 }
 0x345   :  { %207 = vmatmul.bf16.vlgmr.msrb.gmra.mxu2 %v198_v58 }
 0x346   :  { %v191_v59 = vpop.f32.mrf.mxu1 }
 0x3c8   :  { %v208_v0 = vpop.f32.mrf.mxu2 }
 0x3c9   :  { %v214_v1 = vadd.f32 %v308_v63, %v208_v0 }
 0x3cb   :  { %v309_v2 = vclamps-f32 %v214_v1, 1.0 }
 0x3cd   :  { %253 = vmatmul.f32.vlgmr.msrb.gmra.mxu3 %v309_v2 }
 0x3d0   :  { %v210_v3 = vpop.f32.mrf.mxu2 }
 0x450   :  { %v254_v5 = vpop.f32.mrf.mxu3 }
 0x451   :  { %v255_v6 = vadd.f32 %v318_v4, %v254_v5 }
 0x453   :  { %258 = vst.msk [vmem:[%s450_s4] sm:$0xff] %vm257_vm0, %v255_v6 }

</bundles_post_ra>
